<compile_context>
chip_gen: v7x
topology: tpu7x:2x2x1
jax: 0.10.0
libtpu: 0.0.40
codegen_flags: <defaults>
</compile_context>

<pallas_src>
import functools

import jax
import jax.numpy as jnp
from jax.experimental import pallas as pl
from jax.experimental.pallas import tpu as pltpu


def _round_up(x: int, m: int) -> int:
    return ((x + m - 1) // m) * m


def ffn_glu_kernel(x_ref, w1a_ref, b1a_ref, w1b_ref, b1b_ref, w2_ref, b2_ref, o_ref):
    """Fused FFN for one row tile: a = x@W1a+b1a ; b = x@W1b+b1b ; g = a*sigmoid(b) ; y = g@W2+b2."""
    x = x_ref[...]                                                       # (tm, idim_p)
    a = jnp.dot(x, w1a_ref[...], preferred_element_type=jnp.float32) + b1a_ref[...]
    b = jnp.dot(x, w1b_ref[...], preferred_element_type=jnp.float32) + b1b_ref[...]
    g = a * jax.nn.sigmoid(b)                                            # GLU == F.glu(dim=-1)
    # TODO(synk): dropout_rate=0.0 -> identity; a nonzero dropout rate is not emitted here.
    y = jnp.dot(g.astype(w2_ref.dtype), w2_ref[...],
                preferred_element_type=jnp.float32) + b2_ref[...]        # (tm, idim_p)
    o_ref[...] = y.astype(o_ref.dtype)


def positionwise_feed_forward(x, w1, b1, w2, b2, *, row_tile=256):
    """x: (B, T, idim). w1: (idim, 2*hidden), b1: (2*hidden,),
       w2: (hidden, idim), b2: (idim,). Returns (B, T, idim).

    row_tile default 256 is a good v6e/v7x choice; on v5e consider re-sweeping {128, 256}.
    """
    B, T, idim = x.shape
    two_hidden = w1.shape[1]
    hidden = two_hidden // 2
    rows = B * T

    # Lane-dense / MXU-aligned padded dims.
    idim_p = _round_up(idim, 128)
    hidden_p = _round_up(hidden, 128)
    n_row_blocks = pl.cdiv(rows, row_tile)
    rows_p = n_row_blocks * row_tile

    x2d = x.reshape(rows, idim)
    x2d = jnp.pad(x2d, ((0, rows_p - rows), (0, idim_p - idim)))

    # Split W1/b1 into the two GLU halves, pad everything with zeros
    # (zero pads contribute exactly zero to the valid output region).
    w1a = jnp.pad(w1[:, :hidden], ((0, idim_p - idim), (0, hidden_p - hidden)))
    w1b = jnp.pad(w1[:, hidden:], ((0, idim_p - idim), (0, hidden_p - hidden)))
    b1a = jnp.pad(b1[:hidden], (0, hidden_p - hidden)).reshape(1, hidden_p)
    b1b = jnp.pad(b1[hidden:], (0, hidden_p - hidden)).reshape(1, hidden_p)
    w2_p = jnp.pad(w2, ((0, hidden_p - hidden), (0, idim_p - idim)))
    b2_p = jnp.pad(b2, (0, idim_p - idim)).reshape(1, idim_p)

    x_bytes = x.dtype.itemsize
    w_bytes = w1.dtype.itemsize

    # VMEM budget: single-buffered weights/biases + double-buffered x/out tiles + f32 intermediates.
    weight_bytes = (2 * idim_p * hidden_p + hidden_p * idim_p
                    + 2 * hidden_p + idim_p) * w_bytes
    io_bytes = 2 * 2 * row_tile * idim_p * x_bytes            # x + out, 2 buffers each
    interm_bytes = row_tile * (3 * hidden_p + idim_p) * 4     # a, b, g, y in f32
    est = weight_bytes + io_bytes + interm_bytes
    # Headroom, floored at 32 MiB, capped at 96 MiB (v5e/v6e).
    # TODO(synk): for very large idim/hidden on v7x (64 MiB VMEM), cast weights to bf16 or
    # add a hidden-dim reduction grid axis with a VMEM accumulator instead of raising this cap.
    vmem_limit = min(max(int(est * 1.5), 32 * 1024 * 1024), 96 * 1024 * 1024)

    resident = functools.partial(pl.BlockSpec, pipeline_mode=pl.Buffered(1))

    out2d = pl.pallas_call(
        ffn_glu_kernel,
        out_shape=jax.ShapeDtypeStruct((rows_p, idim_p), x.dtype),
        grid=(n_row_blocks,),
        in_specs=[
            pl.BlockSpec((row_tile, idim_p), lambda i: (i, 0)),        # x tile
            resident((idim_p, hidden_p), lambda i: (0, 0)),            # W1a (resident)
            resident((1, hidden_p), lambda i: (0, 0)),                 # b1a
            resident((idim_p, hidden_p), lambda i: (0, 0)),            # W1b (resident)
            resident((1, hidden_p), lambda i: (0, 0)),                 # b1b
            resident((hidden_p, idim_p), lambda i: (0, 0)),            # W2 (resident)
            resident((1, idim_p), lambda i: (0, 0)),                   # b2
        ],
        out_specs=pl.BlockSpec((row_tile, idim_p), lambda i: (i, 0)),
        compiler_params=pltpu.CompilerParams(
            dimension_semantics=("parallel",),
            vmem_limit_bytes=vmem_limit,
        ),
    )(x2d, w1a, b1a, w1b, b1b, w2_p, b2_p)

    return out2d[:rows, :idim].reshape(B, T, idim)


def _reference(x, w1, b1, w2, b2):
    h = jnp.einsum("btd,dh->bth", x, w1) + b1
    hidden = w2.shape[0]
    a, b = h[..., :hidden], h[..., hidden:]
    g = a * jax.nn.sigmoid(b)
    return jnp.einsum("bth,hd->btd", g, w2) + b2


if __name__ == "__main__":
    # Small shapes consistent with the module: batch=2, seq=8, idim=32, hidden=32.
    B, T, idim, hidden = 2, 8, 32, 32
    key = jax.random.PRNGKey(0)
    kx, k1, kb1, k2, kb2 = jax.random.split(key, 5)

    x = jax.random.normal(kx, (B, T, idim), dtype=jnp.float32)
    # Parameters stored as (in, out) = transpose of PyTorch nn.Linear weights.
    w1 = jax.random.normal(k1, (idim, 2 * hidden), dtype=jnp.float32) * 0.05
    b1 = jax.random.normal(kb1, (2 * hidden,), dtype=jnp.float32) * 0.05
    w2 = jax.random.normal(k2, (hidden, idim), dtype=jnp.float32) * 0.05
    b2 = jax.random.normal(kb2, (idim,), dtype=jnp.float32) * 0.05

    out = positionwise_feed_forward(x, w1, b1, w2, b2)
    out = jax.block_until_ready(out)

    ref = _reference(x, w1, b1, w2, b2)
    assert out.shape == (B, T, idim)
    assert jnp.allclose(out, ref, atol=1e-4, rtol=1e-4)

    print("KERNEL_OK")
</pallas_src>

<mosaic_0001>
module attributes {stable_mosaic.version = 11 : i64} {
  func.func @ffn_glu_kernel(%arg0: i32, %arg1: memref<256x128xf32, #tpu.memory_space<vmem>>, %arg2: memref<128x128xf32, #tpu.memory_space<vmem>>, %arg3: memref<1x128xf32, #tpu.memory_space<vmem>>, %arg4: memref<128x128xf32, #tpu.memory_space<vmem>>, %arg5: memref<1x128xf32, #tpu.memory_space<vmem>>, %arg6: memref<128x128xf32, #tpu.memory_space<vmem>>, %arg7: memref<1x128xf32, #tpu.memory_space<vmem>>, %arg8: memref<256x128xf32, #tpu.memory_space<vmem>>) attributes {dimension_semantics = [#tpu.dimension_semantics<parallel>], iteration_bounds = array<i64: 1>, scalar_prefetch = 0 : i64, scratch_operands = 0 : i64, tpu.core_type = #tpu.core_type<tc>, window_params = [{transform_indices = @transform_0, window_bounds = array<i64: 256, 128>}, {pipeline_mode = #tpu.pipeline_mode<synchronous>, transform_indices = @transform_1, window_bounds = array<i64: 128, 128>}, {pipeline_mode = #tpu.pipeline_mode<synchronous>, transform_indices = @transform_2, window_bounds = array<i64: 1, 128>}, {pipeline_mode = #tpu.pipeline_mode<synchronous>, transform_indices = @transform_3, window_bounds = array<i64: 128, 128>}, {pipeline_mode = #tpu.pipeline_mode<synchronous>, transform_indices = @transform_4, window_bounds = array<i64: 1, 128>}, {pipeline_mode = #tpu.pipeline_mode<synchronous>, transform_indices = @transform_5, window_bounds = array<i64: 128, 128>}, {pipeline_mode = #tpu.pipeline_mode<synchronous>, transform_indices = @transform_6, window_bounds = array<i64: 1, 128>}, {transform_indices = @transform_7, window_bounds = array<i64: 256, 128>}]} {
    %c0 = arith.constant 0 : index
    %c0_0 = arith.constant 0 : index
    %0 = vector.load %arg1[%c0, %c0_0] : memref<256x128xf32, #tpu.memory_space<vmem>>, vector<256x128xf32>
    %c0_1 = arith.constant 0 : index
    %c0_2 = arith.constant 0 : index
    %1 = vector.load %arg2[%c0_1, %c0_2] : memref<128x128xf32, #tpu.memory_space<vmem>>, vector<128x128xf32>
    %cst = arith.constant dense<0.000000e+00> : vector<256x128xf32>
    %2 = tpu.matmul %0, %1, %cst {dimension_numbers = #tpu.dot_dimension_numbers<[1], [0], [0], [1], [0, 0, 1, 1], [], []>} : vector<256x128xf32>, vector<128x128xf32>, vector<256x128xf32> -> vector<256x128xf32>
    %c0_3 = arith.constant 0 : index
    %c0_4 = arith.constant 0 : index
    %3 = vector.load %arg3[%c0_3, %c0_4] : memref<1x128xf32, #tpu.memory_space<vmem>>, vector<1x128xf32>
    %4 = vector.broadcast %3 : vector<1x128xf32> to vector<256x128xf32>
    %5 = arith.addf %2, %4 : vector<256x128xf32>
    %c0_5 = arith.constant 0 : index
    %c0_6 = arith.constant 0 : index
    %6 = vector.load %arg4[%c0_5, %c0_6] : memref<128x128xf32, #tpu.memory_space<vmem>>, vector<128x128xf32>
    %cst_7 = arith.constant dense<0.000000e+00> : vector<256x128xf32>
    %7 = tpu.matmul %0, %6, %cst_7 {dimension_numbers = #tpu.dot_dimension_numbers<[1], [0], [0], [1], [0, 0, 1, 1], [], []>} : vector<256x128xf32>, vector<128x128xf32>, vector<256x128xf32> -> vector<256x128xf32>
    %c0_8 = arith.constant 0 : index
    %c0_9 = arith.constant 0 : index
    %8 = vector.load %arg5[%c0_8, %c0_9] : memref<1x128xf32, #tpu.memory_space<vmem>>, vector<1x128xf32>
    %9 = vector.broadcast %8 : vector<1x128xf32> to vector<256x128xf32>
    %10 = arith.addf %7, %9 : vector<256x128xf32>
    %11 = arith.negf %10 : vector<256x128xf32>
    %12 = math.exp %11 : vector<256x128xf32>
    %cst_10 = arith.constant 1.000000e+00 : f32
    %13 = vector.broadcast %cst_10 : f32 to vector<256x128xf32>
    %14 = arith.addf %13, %12 : vector<256x128xf32>
    %15 = arith.divf %13, %14 : vector<256x128xf32>
    %16 = arith.mulf %5, %15 : vector<256x128xf32>
    %c0_11 = arith.constant 0 : index
    %c0_12 = arith.constant 0 : index
    %17 = vector.load %arg6[%c0_11, %c0_12] : memref<128x128xf32, #tpu.memory_space<vmem>>, vector<128x128xf32>
    %cst_13 = arith.constant dense<0.000000e+00> : vector<256x128xf32>
    %18 = tpu.matmul %16, %17, %cst_13 {dimension_numbers = #tpu.dot_dimension_numbers<[1], [0], [0], [1], [0, 0, 1, 1], [], []>} : vector<256x128xf32>, vector<128x128xf32>, vector<256x128xf32> -> vector<256x128xf32>
    %c0_14 = arith.constant 0 : index
    %c0_15 = arith.constant 0 : index
    %19 = vector.load %arg7[%c0_14, %c0_15] : memref<1x128xf32, #tpu.memory_space<vmem>>, vector<1x128xf32>
    %20 = vector.broadcast %19 : vector<1x128xf32> to vector<256x128xf32>
    %21 = arith.addf %18, %20 : vector<256x128xf32>
    %c0_16 = arith.constant 0 : index
    %c0_17 = arith.constant 0 : index
    %22 = vector.load %arg8[%c0_16, %c0_17] : memref<256x128xf32, #tpu.memory_space<vmem>>, vector<256x128xf32>
    tpu.vector_store %arg8[%c0_16, %c0_17], %21 {strides = array<i32>} : memref<256x128xf32, #tpu.memory_space<vmem>>, vector<256x128xf32>,
    return
  }
  func.func @transform_0(%arg0: i32) -> (i32, i32) {
    %c0_i32 = arith.constant 0 : i32
    %c0_i32_0 = arith.constant 0 : i32
    return %arg0, %c0_i32 : i32, i32
  }
  func.func @transform_1(%arg0: i32) -> (i32, i32) {
    %c0_i32 = arith.constant 0 : i32
    %c0_i32_0 = arith.constant 0 : i32
    %c0_i32_1 = arith.constant 0 : i32
    return %c0_i32, %c0_i32_0 : i32, i32
  }
  func.func @transform_2(%arg0: i32) -> (i32, i32) {
    %c0_i32 = arith.constant 0 : i32
    %c0_i32_0 = arith.constant 0 : i32
    %c0_i32_1 = arith.constant 0 : i32
    return %c0_i32, %c0_i32_0 : i32, i32
  }
  func.func @transform_3(%arg0: i32) -> (i32, i32) {
    %c0_i32 = arith.constant 0 : i32
    %c0_i32_0 = arith.constant 0 : i32
    %c0_i32_1 = arith.constant 0 : i32
    return %c0_i32, %c0_i32_0 : i32, i32
  }
  func.func @transform_4(%arg0: i32) -> (i32, i32) {
    %c0_i32 = arith.constant 0 : i32
    %c0_i32_0 = arith.constant 0 : i32
    %c0_i32_1 = arith.constant 0 : i32
    return %c0_i32, %c0_i32_0 : i32, i32
  }
  func.func @transform_5(%arg0: i32) -> (i32, i32) {
    %c0_i32 = arith.constant 0 : i32
    %c0_i32_0 = arith.constant 0 : i32
    %c0_i32_1 = arith.constant 0 : i32
    return %c0_i32, %c0_i32_0 : i32, i32
  }
  func.func @transform_6(%arg0: i32) -> (i32, i32) {
    %c0_i32 = arith.constant 0 : i32
    %c0_i32_0 = arith.constant 0 : i32
    %c0_i32_1 = arith.constant 0 : i32
    return %c0_i32, %c0_i32_0 : i32, i32
  }
  func.func @transform_7(%arg0: i32) -> (i32, i32) {
    %c0_i32 = arith.constant 0 : i32
    %c0_i32_0 = arith.constant 0 : i32
    return %arg0, %c0_i32 : i32, i32
  }
}

</mosaic_0001>

<bundles_post_ra>
// kernel: tpu_custom_call.1
= control target key start
LH: loop header
LB: loop body
LE: loop exit
PB: predicated region body
PF: predicated region fallthrough
CT: control target
= control target key end

     0   :  { %12 = vsyncpa [#allocation3], 0  ;;  %s2328_s0 = inlined_call_operand.hbm [shape: f32[256,128], index: 0, kind: input, shape index: {}]   ;;  %s2329_s1 = inlined_call_operand.hbm [shape: f32[128,128], index: 1, kind: input, shape index: {}]   ;;  %s2330_s2 = inlined_call_operand.vmem [shape: f32[1,128], index: 2, kind: input, shape index: {}]   ;;  %s2331_s3 = inlined_call_operand.hbm [shape: f32[128,128], index: 3, kind: input, shape index: {}]   ;;  %s2332_s4 = inlined_call_operand.vmem [shape: f32[1,128], index: 4, kind: input, shape index: {}]   ;;  %s2333_s5 = inlined_call_operand.hbm [shape: f32[128,128], index: 5, kind: input, shape index: {}]   ;;  %s2334_s6 = inlined_call_operand.vmem [shape: f32[1,128], index: 6, kind: input, shape index: {}]   ;;  %s2335_s7 = inlined_call_operand.hbm [shape: f32[256,128], index: 7, kind: output, shape index: {}]  }
   0x1   :  { %13 = vsyncpa [#allocation6], 0 }
   0x2   :  { %14 = vsyncpa [#allocation9], 0 }
   0x3   :  { %15 = vsyncpa [#allocation4], 0  ;;  %s1917_s24 = smov [#allocation5]   ;;  %s1918_s26 = smov [#allocation2]  }
   0x4   :  { %s33_s25 = sshll.u32 %s1917_s24, 4  ;;  %s21_s27 = sshll.u32 %s1918_s26, 4  ;;  %s34_s25 = int_to_ptr.vmem [resolvable:$true] %s33_s25  ;;  %s1964_s27 = int_to_ptr.vmem [resolvable:$true] %s21_s27 }
   0x5   :  { %s1799_s30 = scalar_lea.hbm %s2329_s1, 2048 }
   0x6   :  { %p1800_p0 = scmp.ne.s32.totalorder %s2329_s1, %s1799_s30  ;;  %p1803_p1 = scmp.lt.u32.totalorder %s1799_s30, %s2329_s1 }
   0x8   :  { %p1805_p2 = pnand %p1803_p1, %p1800_p0 }
   0xa   :  { %1808 = shalt.err (!%p1805_p2)
}
   0xb   :  { %s1809_s12 = scalar_lea.vmem %s34_s25, 2048  ;;  %p1814_p4 = scmp.lt.s32.totalorder %s34_s25, %s34_s25 }
   0xc   :  { %p1810_p3 = scmp.ne.s32.totalorder %s34_s25, %s1809_s12  ;;  %p1815_p5 = scmp.lt.s32.totalorder %s1809_s12, %s1809_s12 }
   0xe   :  { %p1816_p6 = por %p1815_p5, %p1814_p4 }
  0x10   :  { %p1817_p7 = pnand %p1816_p6, %p1810_p3 }
  0x12   :  { %1820 = shalt.err (!%p1817_p7)
}
  0x13   :  { %s1919_s13 = smov 128   ;;  %s1920_s14 = smov 8  }
  0x14   :  { %39 = dma.hbm_to_vmem [thread:$0]  %s2329_s1, 2048, %s34_s25, [#allocation6], %s1919_s13, %s1919_s13, %s1920_s14  }
  0x15   :  { %s1821_s19 = scalar_lea.hbm %s2328_s0, 4096 }
  0x16   :  { %p1822_p8 = scmp.ne.s32.totalorder %s2328_s0, %s1821_s19  ;;  %p1825_p9 = scmp.lt.u32.totalorder %s1821_s19, %s2328_s0 }
  0x18   :  { %p1827_p10 = pnand %p1825_p9, %p1822_p8 }
  0x1a   :  { %1830 = shalt.err (!%p1827_p10)
}
  0x1b   :  { %s1831_s24 = scalar_lea.vmem %s1964_s27, 4096  ;;  %p1836_p12 = scmp.lt.s32.totalorder %s1964_s27, %s1964_s27 }
  0x1c   :  { %p1832_p11 = scmp.ne.s32.totalorder %s1964_s27, %s1831_s24  ;;  %p1837_p13 = scmp.lt.s32.totalorder %s1831_s24, %s1831_s24 }
  0x1e   :  { %p1838_p0 = por %p1837_p13, %p1836_p12 }
  0x20   :  { %p1839_p1 = pnand %p1838_p0, %p1832_p11 }
  0x22   :  { %1842 = shalt.err (!%p1839_p1)
}
  0x23   :  { %27 = dma.hbm_to_vmem [thread:$0]  %s2328_s0, 4096, %s1964_s27, [#allocation3], %s1919_s13, %s1919_s13, %s1920_s14  }
  0x24   :  { %s1921_s26 = smov [#allocation7]   ;;  %s1922_s29 = smov [#allocation8]  }
  0x25   :  { %s47_s28 = sshll.u32 %s1921_s26, 4  ;;  %s61_s30 = sshll.u32 %s1922_s29, 4  ;;  %s48_s28 = int_to_ptr.vmem [resolvable:$true] %s47_s28  ;;  %s2001_s30 = int_to_ptr.vmem [resolvable:$true] %s61_s30 }
  0x26   :  { %s1843_s10 = scalar_lea.hbm %s2331_s3, 2048 }
  0x27   :  { %p1844_p2 = scmp.ne.s32.totalorder %s2331_s3, %s1843_s10  ;;  %p1847_p3 = scmp.lt.u32.totalorder %s1843_s10, %s2331_s3 }
  0x29   :  { %p1849_p4 = pnand %p1847_p3, %p1844_p2 }
  0x2b   :  { %1852 = shalt.err (!%p1849_p4)
}
  0x2c   :  { %s1853_s0 = scalar_lea.vmem %s48_s28, 2048  ;;  %p1858_p6 = scmp.lt.s32.totalorder %s48_s28, %s48_s28 }
  0x2d   :  { %p1854_p5 = scmp.ne.s32.totalorder %s48_s28, %s1853_s0  ;;  %p1859_p7 = scmp.lt.s32.totalorder %s1853_s0, %s1853_s0 }
  0x2f   :  { %p1860_p8 = por %p1859_p7, %p1858_p6 }
  0x31   :  { %p1861_p9 = pnand %p1860_p8, %p1854_p5 }
  0x33   :  { %1864 = shalt.err (!%p1861_p9)
}
  0x34   :  { %53 = dma.hbm_to_vmem [thread:$0]  %s2331_s3, 2048, %s48_s28, [#allocation6], %s1919_s13, %s1919_s13, %s1920_s14  }
  0x35   :  { %s1865_s20 = scalar_lea.hbm %s2333_s5, 2048 }
  0x36   :  { %p1866_p10 = scmp.ne.s32.totalorder %s2333_s5, %s1865_s20  ;;  %p1869_p11 = scmp.lt.u32.totalorder %s1865_s20, %s2333_s5 }
  0x38   :  { %p1871_p12 = pnand %p1869_p11, %p1866_p10 }
  0x3a   :  { %1874 = shalt.err (!%p1871_p12)
}
  0x3b   :  { %s1875_s1 = scalar_lea.vmem %s2001_s30, 2048  ;;  %p1880_p0 = scmp.lt.s32.totalorder %s2001_s30, %s2001_s30 }
  0x3c   :  { %p1876_p13 = scmp.ne.s32.totalorder %s2001_s30, %s1875_s1  ;;  %p1881_p1 = scmp.lt.s32.totalorder %s1875_s1, %s1875_s1 }
  0x3e   :  { %p1882_p2 = por %p1881_p1, %p1880_p0 }
  0x40   :  { %p1883_p3 = pnand %p1882_p2, %p1876_p13 }
  0x42   :  { %1886 = shalt.err (!%p1883_p3)
}
  0x43   :  { %67 = dma.hbm_to_vmem [thread:$0]  %s2333_s5, 2048, %s2001_s30, [#allocation9], %s1919_s13, %s1919_s13, %s1920_s14  }
  0x44   :  { %1909 = dma.done.wait [#allocation3], 4096  }
  0x45   :  { %1910 = vsyncadd [#allocation3], 4294963200 }
  0x46   :  { %1911 = dma.done.wait [#allocation6], 4096  }
  0x47   :  { %1912 = vsyncadd [#allocation6], 4294963200 }
  0x48   :  { %1913 = dma.done.wait [#allocation9], 2048  }
  0x49   :  { %1914 = vsyncadd [#allocation9], 4294965248  ;;  %v114_v0 = vld [vmem:[#allocation5] sm:$0xff]  ;;  %v115_v1 = vld [vmem:[#allocation5 + $0x8] sm:$0xff] }
  0x4a   :  { %v116_v2 = vld [vmem:[#allocation5 + $0x10] sm:$0xff]  ;;  %v1552_v3 = vpack.c.bf16 %v115_v1, %v114_v0  ;;  %v117_v4 = vld [vmem:[#allocation5 + $0x18] sm:$0xff]  ;;  %v118_v6 = vld [vmem:[#allocation5 + $0x20] sm:$0xff] }
  0x4b   :  { %v1556_v5 = vpack.c.bf16 %v117_v4, %v116_v2  ;;  %v119_v7 = vld [vmem:[#allocation5 + $0x28] sm:$0xff]  ;;  %v2038_v9 = vld [vmem:[#allocation2 + $0x80] sm:$0xff]  ;;  %v120_v10 = vld [vmem:[#allocation5 + $0x30] sm:$0xff] }
  0x4c   :  { %1648 = vmatprep.subr.bf16.mxu1 %v1552_v3  ;;  %1553 = vmatprep.subr.bf16.mxu0 %v1552_v3  ;;  %v1560_v8 = vpack.c.bf16 %v119_v7, %v118_v6  ;;  %v121_v11 = vld [vmem:[#allocation5 + $0x38] sm:$0xff]  ;;  %v122_v13 = vld [vmem:[#allocation5 + $0x40] sm:$0xff]  ;;  %v123_v14 = vld [vmem:[#allocation5 + $0x48] sm:$0xff] }
  0x4d   :  { %1656 = vmatpush3.bf16.msra.mxu1 %v1552_v3  ;;  %1555 = vmatpush3.bf16.msra.mxu0 %v1552_v3  ;;  %v1564_v12 = vpack.c.bf16 %v121_v11, %v120_v10  ;;  %v1568_v15 = vpack.c.bf16 %v123_v14, %v122_v13  ;;  %v124_v16 = vld [vmem:[#allocation5 + $0x50] sm:$0xff]  ;;  %v125_v17 = vld [vmem:[#allocation5 + $0x58] sm:$0xff]  ;;  %v2041_v19 = vld [vmem:[#allocation2] sm:$0xff] }
  0x4e   :  { %1649 = vmatprep.subr.bf16.mxu1 %v1556_v5  ;;  %1557 = vmatprep.subr.bf16.mxu0 %v1556_v5  ;;  %v1572_v18 = vpack.c.bf16 %v125_v17, %v124_v16  ;;  %v126_v20 = vld [vmem:[#allocation5 + $0x60] sm:$0xff]  ;;  %v127_v21 = vld [vmem:[#allocation5 + $0x68] sm:$0xff]  ;;  %v128_v23 = vld [vmem:[#allocation5 + $0x70] sm:$0xff] }
  0x4f   :  { %1368 = vmatprep.mubr.f32.mxu1 %v2038_v9  ;;  %1344 = vmatprep.mubr.f32.mxu0 %v2041_v19  ;;  %v1576_v22 = vpack.c.bf16 %v127_v21, %v126_v20  ;;  %v129_v24 = vld [vmem:[#allocation5 + $0x78] sm:$0xff]  ;;  %v362_v26 = vld [vmem:[#allocation7] sm:$0xff]  ;;  %v363_v27 = vld [vmem:[#allocation7 + $0x8] sm:$0xff] }
  0x50   :  { %v1580_v25 = vpack.c.bf16 %v129_v24, %v128_v23  ;;  %v1584_v28 = vpack.c.bf16 %v363_v27, %v362_v26  ;;  %v364_v29 = vld [vmem:[#allocation7 + $0x10] sm:$0xff]  ;;  %v365_v30 = vld [vmem:[#allocation7 + $0x18] sm:$0xff]  ;;  %v2044_v31 = vld [vmem:[#allocation2 + $0x88] sm:$0xff] }
  0x51   :  { %1657 = vmatpush3.bf16.msra.mxu1 %v1556_v5  ;;  %1559 = vmatpush3.bf16.msra.mxu0 %v1556_v5  ;;  %v2046_v32 = vld [vmem:[#allocation2 + $0x90] sm:$0xff]  ;;  %v1588_v33 = vpack.c.bf16 %v365_v30, %v364_v29  ;;  %v366_v34 = vld [vmem:[#allocation7 + $0x20] sm:$0xff]  ;;  %v367_v35 = vld [vmem:[#allocation7 + $0x28] sm:$0xff] }
  0x52   :  { %1650 = vmatprep.subr.bf16.mxu1 %v1560_v8  ;;  %1561 = vmatprep.subr.bf16.mxu0 %v1560_v8  ;;  %v2048_v36 = vld [vmem:[#allocation2 + $0x8] sm:$0xff]  ;;  %v2053_v37 = vld [vmem:[#allocation2 + $0x98] sm:$0xff]  ;;  %v2055_v38 = vld [vmem:[#allocation2 + $0x10] sm:$0xff]  ;;  %v1592_v40 = vpack.c.bf16 %v367_v35, %v366_v34 }
  0x53   :  { %v2057_v39 = vld [vmem:[#allocation2 + $0xa0] sm:$0xff]  ;;  %v368_v41 = vld [vmem:[#allocation7 + $0x30] sm:$0xff]  ;;  %v369_v42 = vld [vmem:[#allocation7 + $0x38] sm:$0xff] }
  0x54   :  { %v2060_v43 = vld [vmem:[#allocation2 + $0x18] sm:$0xff]  ;;  %v2065_v44 = vld [vmem:[#allocation2 + $0xa8] sm:$0xff]  ;;  %v2067_v45 = vld [vmem:[#allocation2 + $0x20] sm:$0xff]  ;;  %v1596_v47 = vpack.c.bf16 %v369_v42, %v368_v41 }
  0x55   :  { %1658 = vmatpush3.bf16.msra.mxu1 %v1560_v8  ;;  %1563 = vmatpush3.bf16.msra.mxu0 %v1560_v8  ;;  %v2069_v46 = vld [vmem:[#allocation2 + $0xb0] sm:$0xff]  ;;  %v370_v48 = vld [vmem:[#allocation7 + $0x40] sm:$0xff]  ;;  %v371_v49 = vld [vmem:[#allocation7 + $0x48] sm:$0xff] }
  0x56   :  { %1651 = vmatprep.subr.bf16.mxu1 %v1564_v12  ;;  %1565 = vmatprep.subr.bf16.mxu0 %v1564_v12  ;;  %v2072_v50 = vld [vmem:[#allocation2 + $0x28] sm:$0xff]  ;;  %v2077_v51 = vld [vmem:[#allocation2 + $0xb8] sm:$0xff]  ;;  %v88_v52 = vld [vmem:[#allocation2 + $0x30] sm:$0xff]  ;;  %v1600_v54 = vpack.c.bf16 %v371_v49, %v370_v48 }
  0x57   :  { %v2079_v53 = vld [vmem:[#allocation2 + $0xc0] sm:$0xff]  ;;  %v372_v55 = vld [vmem:[#allocation7 + $0x50] sm:$0xff]  ;;  %v373_v56 = vld [vmem:[#allocation7 + $0x58] sm:$0xff] }
  0x58   :  { %v89_v57 = vld [vmem:[#allocation2 + $0x38] sm:$0xff]  ;;  %v2083_v58 = vld [vmem:[#allocation2 + $0xc8] sm:$0xff]  ;;  %v90_v59 = vld [vmem:[#allocation2 + $0x40] sm:$0xff]  ;;  %v1604_v61 = vpack.c.bf16 %v373_v56, %v372_v55 }
  0x59   :  { %1659 = vmatpush3.bf16.msra.mxu1 %v1564_v12  ;;  %1567 = vmatpush3.bf16.msra.mxu0 %v1564_v12  ;;  %v2085_v60 = vld [vmem:[#allocation2 + $0xd0] sm:$0xff]  ;;  %v374_v62 = vld [vmem:[#allocation7 + $0x60] sm:$0xff]  ;;  %v375_v63 = vld [vmem:[#allocation7 + $0x68] sm:$0xff] }
  0x5a   :  { %1652 = vmatprep.subr.bf16.mxu1 %v1568_v15  ;;  %1569 = vmatprep.subr.bf16.mxu0 %v1568_v15  ;;  %v91_v0 = vld [vmem:[#allocation2 + $0x48] sm:$0xff]  ;;  %v109_v1 = vld [vmem:[#allocation2 + $0xd8] sm:$0xff]  ;;  %v92_v2 = vld [vmem:[#allocation2 + $0x50] sm:$0xff]  ;;  %v1608_v4 = vpack.c.bf16 %v375_v63, %v374_v62 }
  0x5b   :  { %v110_v3 = vld [vmem:[#allocation2 + $0xe0] sm:$0xff]  ;;  %v376_v5 = vld [vmem:[#allocation7 + $0x70] sm:$0xff]  ;;  %v377_v6 = vld [vmem:[#allocation7 + $0x78] sm:$0xff] }
  0x5c   :  { %v93_v7 = vld [vmem:[#allocation2 + $0x58] sm:$0xff]  ;;  %v111_v8 = vld [vmem:[#allocation2 + $0xe8] sm:$0xff]  ;;  %v94_v10 = vld [vmem:[#allocation2 + $0x60] sm:$0xff]  ;;  %v1612_v12 = vpack.c.bf16 %v377_v6, %v376_v5 }
  0x5d   :  { %1660 = vmatpush3.bf16.msra.mxu1 %v1568_v15  ;;  %1571 = vmatpush3.bf16.msra.mxu0 %v1568_v15  ;;  %v112_v11 = vld [vmem:[#allocation2 + $0xf0] sm:$0xff]  ;;  %v95_v13 = vld [vmem:[#allocation2 + $0x68] sm:$0xff]  ;;  %v113_v14 = vld [vmem:[#allocation2 + $0xf8] sm:$0xff] }
  0x5e   :  { %1653 = vmatprep.subr.bf16.mxu1 %v1572_v18  ;;  %1573 = vmatprep.subr.bf16.mxu0 %v1572_v18  ;;  %v96_v15 = vld [vmem:[#allocation2 + $0x70] sm:$0xff]  ;;  %v97_v16 = vld [vmem:[#allocation2 + $0x78] sm:$0xff]  ;;  %v835_v17 = vld [vmem:[#allocation8 + $0x8] sm:$0xff] }
  0x5f   :  { %v837_v20 = vld [vmem:[#allocation8 + $0x18] sm:$0xff]  ;;  %v839_v23 = vld [vmem:[#allocation8 + $0x28] sm:$0xff]  ;;  %v846_v34 = vld [vmem:[#allocation8 + $0x60] sm:$0xff] }
  0x60   :  { %v841_v26 = vld [vmem:[#allocation8 + $0x38] sm:$0xff]  ;;  %v843_v29 = vld [vmem:[#allocation8 + $0x48] sm:$0xff] }
  0x61   :  { %1661 = vmatpush3.bf16.msra.mxu1 %v1572_v18  ;;  %1575 = vmatpush3.bf16.msra.mxu0 %v1572_v18  ;;  %v847_v35 = vld [vmem:[#allocation8 + $0x68] sm:$0xff] }
  0x62   :  { %1654 = vmatprep.subr.bf16.mxu1 %v1576_v22  ;;  %1577 = vmatprep.subr.bf16.mxu0 %v1576_v22 }
  0x65   :  { %1662 = vmatpush3.bf16.msra.mxu1 %v1576_v22  ;;  %1579 = vmatpush3.bf16.msra.mxu0 %v1576_v22  ;;  %v838_v22 = vld [vmem:[#allocation8 + $0x20] sm:$0xff] }
  0x66   :  { %1655 = vmatprep.subr.bf16.mxu1 %v1580_v25  ;;  %1581 = vmatprep.subr.bf16.mxu0 %v1580_v25  ;;  %v1624_v24 = vpack.c.bf16 %v839_v23, %v838_v22 }
  0x69   :  { %1663 = vmatpush3.bf16.msra.mxu1 %v1580_v25  ;;  %1583 = vmatpush3.bf16.msra.mxu0 %v1580_v25  ;;  %v840_v25 = vld [vmem:[#allocation8 + $0x30] sm:$0xff] }
  0x6a   :  { %1585 = vmatprep.subr.bf16.mxu1 %v1584_v28  ;;  %v1628_v27 = vpack.c.bf16 %v841_v26, %v840_v25 }
  0x6c   :  { %1369 = vmatmul.mubr.f32.vlgmr.msra.gmra.mrb[0].mxu1 %v2044_v31  ;;  %1345 = vmatmul.mubr.f32.vlgmr.msra.gmra.mrb[0].mxu0 %v2048_v36 }
  0x6d   :  { %1587 = vmatpush3.bf16.msra.mxu1 %v1584_v28  ;;  %1371 = vmatprep.mubr.f32.mxu1 %v2046_v32  ;;  %v842_v28 = vld [vmem:[#allocation8 + $0x40] sm:$0xff] }
  0x6e   :  { %1589 = vmatprep.subr.bf16.mxu1 %v1588_v33  ;;  %1347 = vmatprep.mubr.f32.mxu0 %v2055_v38  ;;  %v1632_v30 = vpack.c.bf16 %v843_v29, %v842_v28 }
  0x70   :  { %1372 = vmatmul.mubr.f32.gmra.mrb[2].mxu1 %v2053_v37  ;;  %1348 = vmatmul.mubr.f32.gmra.mrb[2].mxu0 %v2060_v43 }
  0x71   :  { %1591 = vmatpush3.bf16.msra.mxu1 %v1588_v33  ;;  %1374 = vmatprep.mubr.f32.mxu1 %v2057_v39 }
  0x72   :  { %1593 = vmatprep.subr.bf16.mxu1 %v1592_v40  ;;  %1350 = vmatprep.mubr.f32.mxu0 %v2067_v45 }
  0x74   :  { %1375 = vmatmul.mubr.f32.gmra.mrb[4].mxu1 %v2065_v44  ;;  %1351 = vmatmul.mubr.f32.gmra.mrb[4].mxu0 %v2072_v50 }
  0x75   :  { %1595 = vmatpush3.bf16.msra.mxu1 %v1592_v40  ;;  %1377 = vmatprep.mubr.f32.mxu1 %v2069_v46 }
  0x76   :  { %1597 = vmatprep.subr.bf16.mxu1 %v1596_v47  ;;  %1353 = vmatprep.mubr.f32.mxu0 %v88_v52 }
  0x78   :  { %1378 = vmatmul.mubr.f32.gmra.mrb[6].mxu1 %v2077_v51  ;;  %1354 = vmatmul.mubr.f32.gmra.mrb[6].mxu0 %v89_v57 }
  0x79   :  { %1599 = vmatpush3.bf16.msra.mxu1 %v1596_v47  ;;  %1380 = vmatprep.mubr.f32.mxu1 %v2079_v53 }
  0x7a   :  { %1601 = vmatprep.subr.bf16.mxu1 %v1600_v54  ;;  %1356 = vmatprep.mubr.f32.mxu0 %v90_v59 }
  0x7c   :  { %1381 = vmatmul.mubr.f32.gmra.mrb[8].mxu1 %v2083_v58  ;;  %1357 = vmatmul.mubr.f32.gmra.mrb[8].mxu0 %v91_v0 }
  0x7d   :  { %1603 = vmatpush3.bf16.msra.mxu1 %v1600_v54  ;;  %1383 = vmatprep.mubr.f32.mxu1 %v2085_v60 }
  0x7e   :  { %1605 = vmatprep.subr.bf16.mxu1 %v1604_v61  ;;  %1359 = vmatprep.mubr.f32.mxu0 %v92_v2 }
  0x80   :  { %1384 = vmatmul.mubr.f32.gmra.mrb[10].mxu1 %v109_v1  ;;  %1360 = vmatmul.mubr.f32.gmra.mrb[10].mxu0 %v93_v7 }
  0x81   :  { %1607 = vmatpush3.bf16.msra.mxu1 %v1604_v61  ;;  %1386 = vmatprep.mubr.f32.mxu1 %v110_v3 }
  0x82   :  { %1609 = vmatprep.subr.bf16.mxu1 %v1608_v4  ;;  %1362 = vmatprep.mubr.f32.mxu0 %v94_v10 }
  0x84   :  { %1387 = vmatmul.mubr.f32.gmra.mrb[12].mxu1 %v111_v8  ;;  %1363 = vmatmul.mubr.f32.gmra.mrb[12].mxu0 %v95_v13 }
  0x85   :  { %1611 = vmatpush3.bf16.msra.mxu1 %v1608_v4  ;;  %1389 = vmatprep.mubr.f32.mxu1 %v112_v11  ;;  %v2165_v4 = vld [vmem:[%s2330_s2] ss:$0 sm:$0xff] }
  0x86   :  { %1613 = vmatprep.subr.bf16.mxu1 %v1612_v12  ;;  %1365 = vmatprep.mubr.f32.mxu0 %v96_v15 }
  0x88   :  { %1390 = vmatmul.mubr.f32.gmra.mrb[14].mxu1 %v113_v14  ;;  %1366 = vmatmul.mubr.f32.gmra.mrb[14].mxu0 %v97_v16 }
  0x89   :  { %1615 = vmatpush3.bf16.msra.mxu1 %v1612_v12  ;;  %1424 = vmatprep.mubr.f32.mxu1 %v2041_v19  ;;  %v836_v19 = vld [vmem:[#allocation8 + $0x10] sm:$0xff] }
  0x8a   :  { %v1620_v21 = vpack.c.bf16 %v837_v20, %v836_v19 }
  0x8c   :  { %1425 = vmatmul.mubr.f32.vlgmr.msra.gmra.mrb[16].mxu1 %v2048_v36  ;;  %v1640_v36 = vpack.c.bf16 %v847_v35, %v846_v34 }
  0x8d   :  { %1427 = vmatprep.mubr.f32.mxu1 %v2055_v38  ;;  %v849_v38 = vld [vmem:[#allocation8 + $0x78] sm:$0xff] }
  0x90   :  { %1428 = vmatmul.mubr.f32.gmra.mrb[18].mxu1 %v2060_v43 }
  0x91   :  { %1430 = vmatprep.mubr.f32.mxu1 %v2067_v45 }
  0x94   :  { %1431 = vmatmul.mubr.f32.gmra.mrb[20].mxu1 %v2072_v50 }
  0x95   :  { %1433 = vmatprep.mubr.f32.mxu1 %v88_v52 }
  0x98   :  { %1434 = vmatmul.mubr.f32.gmra.mrb[22].mxu1 %v89_v57 }
  0x99   :  { %1436 = vmatprep.mubr.f32.mxu1 %v90_v59 }
  0x9c   :  { %1437 = vmatmul.mubr.f32.gmra.mrb[24].mxu1 %v91_v0 }
  0x9d   :  { %1439 = vmatprep.mubr.f32.mxu1 %v92_v2 }
  0xa0   :  { %1440 = vmatmul.mubr.f32.gmra.mrb[26].mxu1 %v93_v7 }
  0xa1   :  { %1442 = vmatprep.mubr.f32.mxu1 %v94_v10 }
  0xa4   :  { %1443 = vmatmul.mubr.f32.gmra.mrb[28].mxu1 %v95_v13 }
  0xa5   :  { %1445 = vmatprep.mubr.f32.mxu1 %v96_v15 }
  0xa8   :  { %1446 = vmatmul.mubr.f32.gmra.mrb[30].mxu1 %v97_v16 }
  0xa9   :  { %1448 = vmatprep.mubr.f32.mxu1 %v2038_v9  ;;  %v834_v9 = vld [vmem:[#allocation8] sm:$0xff] }
  0xaa   :  { %v1616_v18 = vpack.c.bf16 %v835_v17, %v834_v9 }
  0xac   :  { %1449 = vmatmul.mubr.f32.gmra.mrb[32].mxu1 %v2044_v31  ;;  %1617 = vmatprep.subr.bf16.mxu0 %v1616_v18  ;;  %v844_v31 = vld [vmem:[#allocation8 + $0x50] sm:$0xff] }
  0xad   :  { %1451 = vmatprep.mubr.f32.mxu1 %v2046_v32  ;;  %1619 = vmatpush3.bf16.msra.mxu0 %v1616_v18  ;;  %v845_v32 = vld [vmem:[#allocation8 + $0x58] sm:$0xff] }
  0xae   :  { %1621 = vmatprep.subr.bf16.mxu0 %v1620_v21  ;;  %v1636_v33 = vpack.c.bf16 %v845_v32, %v844_v31 }
  0xb0   :  { %1452 = vmatmul.mubr.f32.gmra.mrb[34].mxu1 %v2053_v37  ;;  %v848_v37 = vld [vmem:[#allocation8 + $0x70] sm:$0xff] }
  0xb1   :  { %1454 = vmatprep.mubr.f32.mxu1 %v2057_v39  ;;  %1623 = vmatpush3.bf16.msra.mxu0 %v1620_v21  ;;  %v1644_v39 = vpack.c.bf16 %v849_v38, %v848_v37 }
  0xb2   :  { %1625 = vmatprep.subr.bf16.mxu0 %v1624_v24 }
  0xb4   :  { %1455 = vmatmul.mubr.f32.gmra.mrb[36].mxu1 %v2065_v44 }
  0xb5   :  { %1457 = vmatprep.mubr.f32.mxu1 %v2069_v46  ;;  %1627 = vmatpush3.bf16.msra.mxu0 %v1624_v24 }
  0xb6   :  { %1629 = vmatprep.subr.bf16.mxu0 %v1628_v27 }
  0xb8   :  { %1458 = vmatmul.mubr.f32.gmra.mrb[38].mxu1 %v2077_v51 }
  0xb9   :  { %1460 = vmatprep.mubr.f32.mxu1 %v2079_v53  ;;  %1631 = vmatpush3.bf16.msra.mxu0 %v1628_v27 }
  0xba   :  { %1633 = vmatprep.subr.bf16.mxu0 %v1632_v30 }
  0xbc   :  { %1461 = vmatmul.mubr.f32.gmra.mrb[40].mxu1 %v2083_v58 }
  0xbd   :  { %1463 = vmatprep.mubr.f32.mxu1 %v2085_v60  ;;  %1635 = vmatpush3.bf16.msra.mxu0 %v1632_v30 }
  0xbe   :  { %1637 = vmatprep.subr.bf16.mxu0 %v1636_v33 }
  0xc0   :  { %1464 = vmatmul.mubr.f32.gmra.mrb[42].mxu1 %v109_v1 }
  0xc1   :  { %1466 = vmatprep.mubr.f32.mxu1 %v110_v3  ;;  %1639 = vmatpush3.bf16.msra.mxu0 %v1636_v33 }
  0xc2   :  { %1641 = vmatprep.subr.bf16.mxu0 %v1640_v36 }
  0xc4   :  { %1467 = vmatmul.mubr.f32.gmra.mrb[44].mxu1 %v111_v8 }
  0xc5   :  { %1469 = vmatprep.mubr.f32.mxu1 %v112_v11  ;;  %1643 = vmatpush3.bf16.msra.mxu0 %v1640_v36  ;;  %v2179_v11 = vld [vmem:[%s2332_s4] ss:$0 sm:$0xff] }
  0xc6   :  { %1645 = vmatprep.subr.bf16.mxu0 %v1644_v39 }
  0xc8   :  { %1470 = vmatmul.mubr.f32.gmra.mrb[46].mxu1 %v113_v14 }
  0xc9   :  { %1647 = vmatpush3.bf16.msra.mxu0 %v1644_v39 }
 0x13f   :  { %v2106_v40 = vpop.f32.mrb[0].mxu1  ;;  %v2108_v41 = vpop.f32.mrb[0].mxu0 }
 0x140   :  { %v2110_v42 = vpop.f32.mrb[1].mxu1  ;;  %v2112_v43 = vpop.f32.mrb[1].mxu0 }
 0x143   :  { %v2114_v44 = vpop.f32.mrb[2].mxu1  ;;  %v2116_v45 = vpop.f32.mrb[2].mxu0 }
 0x144   :  { %v2118_v46 = vpop.f32.mrb[3].mxu1  ;;  %v2120_v47 = vpop.f32.mrb[3].mxu0 }
 0x147   :  { %v2122_v48 = vpop.f32.mrb[4].mxu1  ;;  %v2124_v49 = vpop.f32.mrb[4].mxu0 }
 0x148   :  { %v2126_v50 = vpop.f32.mrb[5].mxu1  ;;  %v2128_v51 = vpop.f32.mrb[5].mxu0 }
 0x14b   :  { %v2130_v52 = vpop.f32.mrb[6].mxu1  ;;  %v2132_v53 = vpop.f32.mrb[6].mxu0 }
 0x14c   :  { %v2134_v54 = vpop.f32.mrb[7].mxu1  ;;  %v2136_v55 = vpop.f32.mrb[7].mxu0 }
 0x14f   :  { %v2138_v56 = vpop.f32.mrb[8].mxu1  ;;  %v2140_v57 = vpop.f32.mrb[8].mxu0 }
 0x150   :  { %v2142_v58 = vpop.f32.mrb[9].mxu1  ;;  %v2144_v59 = vpop.f32.mrb[9].mxu0 }
 0x153   :  { %v2146_v60 = vpop.f32.mrb[10].mxu1  ;;  %v2148_v61 = vpop.f32.mrb[10].mxu0 }
 0x154   :  { %v2150_v62 = vpop.f32.mrb[11].mxu1  ;;  %v2152_v63 = vpop.f32.mrb[11].mxu0 }
 0x157   :  { %v2154_v0 = vpop.f32.mrb[12].mxu1  ;;  %v2156_v1 = vpop.f32.mrb[12].mxu0 }
 0x158   :  { %v2158_v2 = vpop.f32.mrb[13].mxu1  ;;  %v2160_v3 = vpop.f32.mrb[13].mxu0 }
 0x15b   :  { %v1391_v5 = vpop.f32.mrb[14].mxu1  ;;  %v2167_v6 = vpop.f32.mrb[14].mxu0 }
 0x15c   :  { %v2170_v7 = vadd.f32 %v1391_v5, %v2165_v4  ;;  %v2172_v8 = vpop.f32.mrb[15].mxu1  ;;  %v2174_v10 = vpop.f32.mrb[15].mxu0 }
 0x15f   :  { %v1426_v12 = vpop.f32.mrb[16].mxu1 }
 0x160   :  { %v457_v13 = vadd.f32 %v1426_v12, %v2179_v11  ;;  %v451_v14 = vpop.f32.mrb[17].mxu1 }
 0x161   :  { %v452_v15 = vadd.f32 %v2179_v11, %v451_v14 }
 0x162   :  { %v1136_v16 = vmul.f32 -1.442695, %v457_v13 }
 0x163   :  { %v1135_v9 = vmul.f32 -1.442695, %v452_v15  ;;  %v1429_v17 = vpop.f32.mrb[18].mxu1 }
 0x164   :  { %1671 = vpow2.f32 %v1136_v16  ;;  %v467_v18 = vadd.f32 %v1429_v17, %v2179_v11  ;;  %v461_v19 = vpop.f32.mrb[19].mxu1 }
 0x165   :  { %1673 = vpow2.f32 %v1135_v9  ;;  %v462_v20 = vadd.f32 %v2179_v11, %v461_v19 }
 0x166   :  { %v1138_v21 = vmul.f32 -1.442695, %v467_v18 }
 0x167   :  { %v1137_v22 = vmul.f32 -1.442695, %v462_v20  ;;  %v1432_v23 = vpop.f32.mrb[20].mxu1 }
 0x168   :  { %1675 = vpow2.f32 %v1138_v21  ;;  %v477_v24 = vadd.f32 %v1432_v23, %v2179_v11  ;;  %v471_v25 = vpop.f32.mrb[21].mxu1 }
 0x169   :  { %1677 = vpow2.f32 %v1137_v22  ;;  %v472_v26 = vadd.f32 %v2179_v11, %v471_v25 }
 0x16a   :  { %v1140_v27 = vmul.f32 -1.442695, %v477_v24 }
 0x16b   :  { %v1139_v28 = vmul.f32 -1.442695, %v472_v26  ;;  %v1435_v29 = vpop.f32.mrb[22].mxu1 }
 0x16c   :  { %1679 = vpow2.f32 %v1140_v27  ;;  %v487_v30 = vadd.f32 %v1435_v29, %v2179_v11  ;;  %v481_v31 = vpop.f32.mrb[23].mxu1 }
 0x16d   :  { %1681 = vpow2.f32 %v1139_v28  ;;  %v482_v32 = vadd.f32 %v2179_v11, %v481_v31 }
 0x16e   :  { %v1672_v33 = vpop.eup %1671  ;;  %v1142_v34 = vmul.f32 -1.442695, %v487_v30 }
 0x16f   :  { %v1674_v35 = vpop.eup %1673  ;;  %v707_v36 = vadd.f32 1.0, %v1672_v33  ;;  %v1141_v37 = vmul.f32 -1.442695, %v482_v32  ;;  %v1438_v38 = vpop.f32.mrb[24].mxu1  ;;  %v209_v32 = vadd.f32 %v2108_v41, %v2165_v4 }
 0x170   :  { %v706_v39 = vadd.f32 1.0, %v1674_v35  ;;  %1683 = vpow2.f32 %v1142_v34  ;;  %v497_v5 = vadd.f32 %v1438_v38, %v2179_v11  ;;  %v491_v12 = vpop.f32.mrb[25].mxu1  ;;  %v204_v34 = vadd.f32 %v2165_v4, %v2112_v43 }
 0x171   :  { %1685 = vrcp.f32 %v707_v36  ;;  %v492_v13 = vadd.f32 %v2179_v11, %v491_v12 }
 0x172   :  { %v1676_v14 = vpop.eup %1675  ;;  %1687 = vrcp.f32 %v706_v39  ;;  %v1144_v15 = vmul.f32 -1.442695, %v497_v5 }
 0x173   :  { %v1678_v16 = vpop.eup %1677  ;;  %v709_v9 = vadd.f32 1.0, %v1676_v14  ;;  %1689 = vpow2.f32 %v1141_v37  ;;  %v1143_v17 = vmul.f32 -1.442695, %v492_v13  ;;  %v1441_v18 = vpop.f32.mrb[26].mxu1 }
 0x174   :  { %v708_v19 = vadd.f32 1.0, %v1678_v16  ;;  %1691 = vpow2.f32 %v1144_v15  ;;  %v507_v20 = vadd.f32 %v1441_v18, %v2179_v11  ;;  %v501_v21 = vpop.f32.mrb[27].mxu1  ;;  %v219_v15 = vadd.f32 %v2116_v45, %v2165_v4 }
 0x175   :  { %1693 = vrcp.f32 %v709_v9  ;;  %v502_v22 = vadd.f32 %v2179_v11, %v501_v21 }
 0x176   :  { %v1680_v23 = vpop.eup %1679  ;;  %1695 = vrcp.f32 %v708_v19  ;;  %v1146_v24 = vmul.f32 -1.442695, %v507_v20 }
 0x177   :  { %v1682_v25 = vpop.eup %1681  ;;  %v711_v26 = vadd.f32 1.0, %v1680_v23  ;;  %1697 = vpow2.f32 %v1143_v17  ;;  %v1145_v27 = vmul.f32 -1.442695, %v502_v22  ;;  %v1444_v28 = vpop.f32.mrb[28].mxu1  ;;  %v214_v17 = vadd.f32 %v2165_v4, %v2120_v47 }
 0x178   :  { %v710_v29 = vadd.f32 1.0, %v1682_v25  ;;  %1699 = vpow2.f32 %v1146_v24  ;;  %v517_v30 = vadd.f32 %v1444_v28, %v2179_v11  ;;  %v511_v31 = vpop.f32.mrb[29].mxu1  ;;  %v229_v28 = vadd.f32 %v2124_v49, %v2165_v4 }
 0x179   :  { %1701 = vrcp.f32 %v711_v26  ;;  %v512_v33 = vadd.f32 %v2179_v11, %v511_v31  ;;  %v224_v31 = vadd.f32 %v2165_v4, %v2128_v51  ;;  %v239_v51 = vadd.f32 %v2132_v53, %v2165_v4 }
 0x17a   :  { %v1684_v35 = vpop.eup %1683  ;;  %1703 = vrcp.f32 %v710_v29  ;;  %v1148_v36 = vmul.f32 -1.442695, %v517_v30  ;;  %v249_v53 = vadd.f32 %v2140_v57, %v2165_v4  ;;  %v244_v57 = vadd.f32 %v2165_v4, %v2144_v59 }
 0x17b   :  { %v1686_v37 = vpop.eup %1685  ;;  %v713_v38 = vadd.f32 1.0, %v1684_v35  ;;  %1705 = vpow2.f32 %v1145_v27  ;;  %v1147_v39 = vmul.f32 -1.442695, %v512_v33  ;;  %v1447_v5 = vpop.f32.mrb[30].mxu1 }
 0x17c   :  { %v1688_v12 = vpop.eup %1687  ;;  %1707 = vpow2.f32 %v1148_v36  ;;  %v803_v13 = vmul.f32 %v1686_v37, %v209_v32  ;;  %v527_v14 = vadd.f32 %v1447_v5, %v2179_v11  ;;  %v521_v41 = vpop.f32.mrb[31].mxu1 }
 0x17d   :  { %v1690_v16 = vpop.eup %1689  ;;  %1709 = vrcp.f32 %v713_v38  ;;  %v802_v43 = vmul.f32 %v1688_v12, %v204_v34  ;;  %v522_v9 = vadd.f32 %v2179_v11, %v521_v41 }
 0x17e   :  { %v1692_v18 = vpop.eup %1691  ;;  %v712_v19 = vadd.f32 1.0, %v1690_v16  ;;  %1711 = vpow2.f32 %v1147_v39  ;;  %v1150_v20 = vmul.f32 -1.442695, %v527_v14 }
 0x17f   :  { %v1694_v21 = vpop.eup %1693  ;;  %v715_v22 = vadd.f32 1.0, %v1692_v18  ;;  %v1149_v23 = vmul.f32 -1.442695, %v522_v9  ;;  %v1450_v24 = vpop.f32.mrb[32].mxu1  ;;  %1504 = vmatprep.mubr.f32.mxu0 %v802_v43  ;;  %v234_v18 = vadd.f32 %v2165_v4, %v2136_v55 }
 0x180   :  { %v1696_v25 = vpop.eup %1695  ;;  %1713 = vrcp.f32 %v712_v19  ;;  %v805_v45 = vmul.f32 %v1694_v21, %v219_v15  ;;  %v537_v26 = vadd.f32 %v1450_v24, %v2179_v11  ;;  %v531_v27 = vpop.f32.mrb[33].mxu1  ;;  %1505 = vmatmul.mubr.f32.vlgmr.msra.gmra.mrb[16].mxu0 %v803_v13 }
 0x181   :  { %v1698_v47 = vpop.eup %1697  ;;  %1715 = vrcp.f32 %v715_v22  ;;  %v804_v29 = vmul.f32 %v1696_v25, %v214_v17  ;;  %v532_v30 = vadd.f32 %v2179_v11, %v531_v27 }
 0x182   :  { %v1700_v32 = vpop.eup %1699  ;;  %v714_v33 = vadd.f32 1.0, %v1698_v47  ;;  %1717 = vpow2.f32 %v1150_v20  ;;  %v1152_v34 = vmul.f32 -1.442695, %v537_v26 }
 0x183   :  { %v1702_v35 = vpop.eup %1701  ;;  %v717_v36 = vadd.f32 1.0, %v1700_v32  ;;  %1719 = vpow2.f32 %v1149_v23  ;;  %v1151_v37 = vmul.f32 -1.442695, %v532_v30  ;;  %v1453_v38 = vpop.f32.mrb[34].mxu1  ;;  %1507 = vmatprep.mubr.f32.mxu0 %v804_v29 }
 0x184   :  { %v1704_v39 = vpop.eup %1703  ;;  %1721 = vrcp.f32 %v714_v33  ;;  %v807_v49 = vmul.f32 %v1702_v35, %v229_v28  ;;  %v547_v5 = vadd.f32 %v1453_v38, %v2179_v11  ;;  %v541_v12 = vpop.f32.mrb[35].mxu1  ;;  %1508 = vmatmul.mubr.f32.gmra.mrb[18].mxu0 %v805_v45 }
 0x185   :  { %v1706_v13 = vpop.eup %1705  ;;  %1723 = vrcp.f32 %v717_v36  ;;  %v806_v14 = vmul.f32 %v1704_v39, %v224_v31  ;;  %v542_v41 = vadd.f32 %v2179_v11, %v541_v12 }
 0x186   :  { %v1708_v15 = vpop.eup %1707  ;;  %v716_v16 = vadd.f32 1.0, %v1706_v13  ;;  %1725 = vpow2.f32 %v1152_v34  ;;  %v1154_v43 = vmul.f32 -1.442695, %v547_v5  ;;  %v259_v34 = vadd.f32 %v2148_v61, %v2165_v4 }
 0x187   :  { %v1710_v9 = vpop.eup %1709  ;;  %v719_v17 = vadd.f32 1.0, %v1708_v15  ;;  %1727 = vpow2.f32 %v1151_v37  ;;  %v1456_v19 = vpop.f32.mrb[36].mxu1  ;;  %1510 = vmatprep.mubr.f32.mxu0 %v806_v14  ;;  %v1153_v21 = vmul.f32 -1.442695, %v542_v41 }
 0x188   :  { %v1712_v20 = vpop.eup %1711  ;;  %1729 = vrcp.f32 %v716_v16  ;;  %v809_v22 = vmul.f32 %v1710_v9, %v239_v51  ;;  %v557_v23 = vadd.f32 %v1456_v19, %v2179_v11  ;;  %v551_v24 = vpop.f32.mrb[37].mxu1  ;;  %1511 = vmatmul.mubr.f32.gmra.mrb[20].mxu0 %v807_v49  ;;  %v254_v51 = vadd.f32 %v2165_v4, %v2152_v63 }
 0x189   :  { %1731 = vrcp.f32 %v719_v17  ;;  %v718_v25 = vadd.f32 1.0, %v1712_v20  ;;  %v552_v45 = vadd.f32 %v2179_v11, %v551_v24  ;;  %v269_v16 = vadd.f32 %v2156_v1, %v2165_v4 }
 0x18a   :  { %v1714_v26 = vpop.eup %1713  ;;  %1733 = vpow2.f32 %v1154_v43  ;;  %v1156_v55 = vmul.f32 -1.442695, %v557_v23 }
 0x18b   :  { %v1716_v27 = vpop.eup %1715  ;;  %1735 = vrcp.f32 %v718_v25  ;;  %v808_v28 = vmul.f32 %v1714_v26, %v234_v18  ;;  %v1155_v47 = vmul.f32 -1.442695, %v552_v45  ;;  %v1459_v29 = vpop.f32.mrb[38].mxu1 }
 0x18c   :  { %v1718_v30 = vpop.eup %1717  ;;  %1737 = vpow2.f32 %v1153_v21  ;;  %v811_v31 = vmul.f32 %v1716_v27, %v249_v53  ;;  %v567_v32 = vadd.f32 %v1459_v29, %v2179_v11  ;;  %v561_v33 = vpop.f32.mrb[39].mxu1  ;;  %v264_v53 = vadd.f32 %v2165_v4, %v2160_v3 }
 0x18d   :  { %v1720_v35 = vpop.eup %1719  ;;  %v721_v36 = vadd.f32 1.0, %v1718_v30  ;;  %1739 = vpow2.f32 %v1156_v55  ;;  %1513 = vmatprep.mubr.f32.mxu0 %v808_v28  ;;  %v562_v37 = vadd.f32 %v2179_v11, %v561_v33 }
 0x18e   :  { %v1722_v38 = vpop.eup %1721  ;;  %v720_v39 = vadd.f32 1.0, %v1720_v35  ;;  %1741 = vpow2.f32 %v1155_v47  ;;  %v1158_v59 = vmul.f32 -1.442695, %v567_v32  ;;  %1514 = vmatmul.mubr.f32.gmra.mrb[22].mxu0 %v809_v22 }
 0x18f   :  { %v1724_v49 = vpop.eup %1723  ;;  %1743 = vrcp.f32 %v721_v36  ;;  %v810_v5 = vmul.f32 %v1722_v38, %v244_v57  ;;  %v1157_v12 = vmul.f32 -1.442695, %v562_v37  ;;  %v1462_v13 = vpop.f32.mrb[40].mxu1  ;;  %v279_v57 = vadd.f32 %v2167_v6, %v2165_v4 }
 0x190   :  { %v1726_v61 = vpop.eup %1725  ;;  %1745 = vrcp.f32 %v720_v39  ;;  %v813_v14 = vmul.f32 %v1724_v49, %v259_v34  ;;  %v577_v41 = vadd.f32 %v1462_v13, %v2179_v11  ;;  %v571_v15 = vpop.f32.mrb[41].mxu1 }
 0x191   :  { %v1728_v43 = vpop.eup %1727  ;;  %v723_v9 = vadd.f32 1.0, %v1726_v61  ;;  %1747 = vpow2.f32 %v1158_v59  ;;  %1516 = vmatprep.mubr.f32.mxu0 %v810_v5  ;;  %v572_v17 = vadd.f32 %v2179_v11, %v571_v15 }
 0x192   :  { %v1730_v18 = vpop.eup %1729  ;;  %v722_v19 = vadd.f32 1.0, %v1728_v43  ;;  %1749 = vpow2.f32 %v1157_v12  ;;  %v1160_v63 = vmul.f32 -1.442695, %v577_v41  ;;  %1517 = vmatmul.mubr.f32.gmra.mrb[24].mxu0 %v811_v31  ;;  %v274_v31 = vadd.f32 %v2165_v4, %v2174_v10 }
 0x193   :  { %v1732_v20 = vpop.eup %1731  ;;  %1751 = vrcp.f32 %v723_v9  ;;  %v812_v21 = vmul.f32 %v1730_v18, %v254_v51  ;;  %v1159_v22 = vmul.f32 -1.442695, %v572_v17  ;;  %v1465_v23 = vpop.f32.mrb[42].mxu1  ;;  %v289_v12 = vadd.f32 %v2106_v40, %v2165_v4 }
 0x194   :  { %v1734_v1 = vpop.eup %1733  ;;  %1753 = vrcp.f32 %v722_v19  ;;  %v815_v24 = vmul.f32 %v1732_v20, %v269_v16  ;;  %v587_v25 = vadd.f32 %v1465_v23, %v2179_v11  ;;  %v581_v45 = vpop.f32.mrb[43].mxu1  ;;  %v284_v9 = vadd.f32 %v2165_v4, %v2110_v42 }
 0x195   :  { %v1736_v26 = vpop.eup %1735  ;;  %v725_v55 = vadd.f32 1.0, %v1734_v1  ;;  %1755 = vpow2.f32 %v1160_v63  ;;  %1519 = vmatprep.mubr.f32.mxu0 %v812_v21  ;;  %v582_v27 = vadd.f32 %v2179_v11, %v581_v45 }
 0x196   :  { %v1738_v28 = vpop.eup %1737  ;;  %1757 = vpow2.f32 %v1159_v22  ;;  %v814_v3 = vmul.f32 %v1736_v26, %v264_v53  ;;  %v1162_v47 = vmul.f32 -1.442695, %v587_v25  ;;  %1520 = vmatmul.mubr.f32.gmra.mrb[26].mxu0 %v813_v14  ;;  %v299_v22 = vadd.f32 %v2114_v44, %v2165_v4 }
 0x197   :  { %v1740_v29 = vpop.eup %1739  ;;  %1759 = vrcp.f32 %v725_v55  ;;  %v724_v30 = vadd.f32 1.0, %v1738_v28  ;;  %v1468_v32 = vpop.f32.mrb[44].mxu1  ;;  %v1161_v35 = vmul.f32 -1.442695, %v582_v27  ;;  %v294_v25 = vadd.f32 %v2165_v4, %v2118_v46 }
 0x198   :  { %v1742_v33 = vpop.eup %1741  ;;  %v727_v34 = vadd.f32 1.0, %v1740_v29  ;;  %1761 = vpow2.f32 %v1162_v47  ;;  %v597_v36 = vadd.f32 %v1468_v32, %v2179_v11  ;;  %1522 = vmatprep.mubr.f32.mxu0 %v814_v3  ;;  %v591_v37 = vpop.f32.mrb[45].mxu1  ;;  %v309_v55 = vadd.f32 %v2122_v48, %v2165_v4 }
 0x199   :  { %v1744_v38 = vpop.eup %1743  ;;  %1763 = vrcp.f32 %v724_v30  ;;  %v726_v39 = vadd.f32 1.0, %v1742_v33  ;;  %v592_v6 = vadd.f32 %v2179_v11, %v591_v37  ;;  %v304_v28 = vadd.f32 %v2165_v4, %v2126_v50 }
 0x19a   :  { %v1746_v59 = vpop.eup %1745  ;;  %1765 = vrcp.f32 %v727_v34  ;;  %v817_v49 = vmul.f32 %v1744_v38, %v279_v57  ;;  %v1164_v5 = vmul.f32 -1.442695, %v597_v36  ;;  %1523 = vmatmul.mubr.f32.gmra.mrb[28].mxu0 %v815_v24  ;;  %v314_v33 = vadd.f32 %v2165_v4, %v2134_v54 }
 0x19b   :  { %v1748_v10 = vpop.eup %1747  ;;  %1767 = vrcp.f32 %v726_v39  ;;  %v816_v51 = vmul.f32 %v1746_v59, %v274_v31  ;;  %v1471_v13 = vpop.f32.mrb[46].mxu1  ;;  %v1163_v41 = vmul.f32 -1.442695, %v592_v6  ;;  %v319_v31 = vadd.f32 %v2130_v52, %v2165_v4 }
 0x19c   :  { %v1750_v61 = vpop.eup %1749  ;;  %v729_v14 = vadd.f32 1.0, %v1748_v10  ;;  %1769 = vpow2.f32 %v1161_v35  ;;  %v607_v15 = vadd.f32 %v1471_v13, %v2179_v11  ;;  %v601_v16 = vpop.f32.mrb[47].mxu1  ;;  %v329_v39 = vadd.f32 %v2138_v56, %v2165_v4 }
 0x19d   :  { %v1752_v43 = vpop.eup %1751  ;;  %v728_v17 = vadd.f32 1.0, %v1750_v61  ;;  %1771 = vpow2.f32 %v1164_v5  ;;  %1525 = vmatprep.mubr.f32.mxu0 %v816_v51  ;;  %v602_v18 = vadd.f32 %v2179_v11, %v601_v16  ;;  %v324_v59 = vadd.f32 %v2165_v4, %v2142_v58 }
 0x19e   :  { %v1754_v40 = vpop.eup %1753  ;;  %1773 = vrcp.f32 %v729_v14  ;;  %v1166_v19 = vmul.f32 -1.442695, %v607_v15  ;;  %1526 = vmatmul.mubr.f32.gmra.mrb[30].mxu0 %v817_v49  ;;  %v819_v63 = vmul.f32 %v1752_v43, %v289_v12  ;;  %v339_v12 = vadd.f32 %v2146_v60, %v2165_v4 }
 0x19f   :  { %v1756_v53 = vpop.eup %1755  ;;  %1775 = vrcp.f32 %v728_v17  ;;  %v818_v20 = vmul.f32 %v1754_v40, %v284_v9  ;;  %v1165_v42 = vmul.f32 -1.442695, %v602_v18  ;;  %v334_v58 = vadd.f32 %v2165_v4, %v2150_v62 }
 0x1a0   :  { %v1758_v21 = vpop.eup %1757  ;;  %v731_v23 = vadd.f32 1.0, %v1756_v53  ;;  %1777 = vpow2.f32 %v1163_v41  ;;  %v349_v41 = vadd.f32 %v2154_v0, %v2165_v4  ;;  %v344_v60 = vadd.f32 %v2165_v4, %v2158_v2  ;;  %v2279_v2 = vld [vmem:[%s2334_s6] ss:$0 sm:$0xff]  ;;  %s1923_s6 = smov [#allocation10]  }
 0x1a1   :  { %v1760_v1 = vpop.eup %1759  ;;  %v730_v24 = vadd.f32 1.0, %v1758_v21  ;;  %1779 = vpow2.f32 %v1166_v19  ;;  %1528 = vmatprep.mubr.f32.mxu0 %v818_v20  ;;  %v354_v62 = vadd.f32 %v2165_v4, %v2172_v8  ;;  %s1119_s30 = sshll.u32 %s1923_s6, 4  ;;  %s1120_s30 = int_to_ptr.vmem [resolvable:$true] %s1119_s30 }
 0x1a2   :  { %v1762_v11 = vpop.eup %1761  ;;  %1781 = vrcp.f32 %v731_v23  ;;  %1529 = vmatmul.mubr.f32.gmra.mrb[32].mxu0 %v819_v63  ;;  %v821_v45 = vmul.f32 %v1760_v1, %v299_v22  ;;  %s1887_s8 = scalar_lea.vmem %s1120_s30, 4096  ;;  %p1892_p5 = scmp.lt.s32.totalorder %s1120_s30, %s1120_s30 }
 0x1a3   :  { %v1764_v26 = vpop.eup %1763  ;;  %1783 = vrcp.f32 %v730_v24  ;;  %v733_v44 = vadd.f32 1.0, %v1762_v11  ;;  %p1888_p4 = scmp.ne.s32.totalorder %s1120_s30, %s1887_s8  ;;  %p1893_p6 = scmp.lt.s32.totalorder %s1887_s8, %s1887_s8 }
 0x1a4   :  { %v1766_v27 = vpop.eup %1765  ;;  %1785 = vpow2.f32 %v1165_v42  ;;  %v820_v3 = vmul.f32 %v1764_v26, %v294_v25 }
 0x1a5   :  { %v1768_v47 = vpop.eup %1767  ;;  %1787 = vrcp.f32 %v733_v44  ;;  %v823_v57 = vmul.f32 %v1766_v27, %v309_v55  ;;  %p1894_p7 = por %p1893_p6, %p1892_p5 }
 0x1a6   :  { %v1770_v29 = vpop.eup %1769  ;;  %1531 = vmatprep.mubr.f32.mxu0 %v820_v3  ;;  %v822_v46 = vmul.f32 %v1768_v47, %v304_v28 }
 0x1a7   :  { %v1772_v30 = vpop.eup %1771  ;;  %v732_v32 = vadd.f32 1.0, %v1770_v29  ;;  %1532 = vmatmul.mubr.f32.gmra.mrb[34].mxu0 %v821_v45  ;;  %p1895_p8 = pnand %p1894_p7, %p1888_p4 }
 0x1a8   :  { %v1774_v48 = vpop.eup %1773  ;;  %v735_v34 = vadd.f32 1.0, %v1772_v30  ;;  %1534 = vmatprep.mubr.f32.mxu0 %v822_v46 }
 0x1a9   :  { %v1776_v50 = vpop.eup %1775  ;;  %1789 = vrcp.f32 %v732_v32  ;;  %v825_v35 = vmul.f32 %v1774_v48, %v319_v31 }
 0x1aa   :  { %v1778_v36 = vpop.eup %1777  ;;  %1791 = vrcp.f32 %v735_v34  ;;  %v824_v37 = vmul.f32 %v1776_v50, %v314_v33 }
 0x1ab   :  { %v1780_v38 = vpop.eup %1779  ;;  %v734_v6 = vadd.f32 1.0, %v1778_v36  ;;  %1535 = vmatmul.mubr.f32.gmra.mrb[36].mxu0 %v823_v57 }
 0x1ac   :  { %v1782_v52 = vpop.eup %1781  ;;  %v737_v49 = vadd.f32 1.0, %v1780_v38  ;;  %1537 = vmatprep.mubr.f32.mxu0 %v824_v37 }
 0x1ad   :  { %v1784_v54 = vpop.eup %1783  ;;  %1793 = vrcp.f32 %v734_v6  ;;  %v827_v5 = vmul.f32 %v1782_v52, %v329_v39 }
 0x1ae   :  { %v1786_v10 = vpop.eup %1785  ;;  %1795 = vrcp.f32 %v737_v49  ;;  %v826_v51 = vmul.f32 %v1784_v54, %v324_v59 }
 0x1af   :  { %v1788_v13 = vpop.eup %1787  ;;  %v736_v61 = vadd.f32 1.0, %v1786_v10  ;;  %1538 = vmatmul.mubr.f32.gmra.mrb[38].mxu0 %v825_v35 }
 0x1b0   :  { %1540 = vmatprep.mubr.f32.mxu0 %v826_v51  ;;  %v829_v56 = vmul.f32 %v1788_v13, %v339_v12 }
 0x1b1   :  { %1797 = vrcp.f32 %v736_v61 }
 0x1b3   :  { %v1790_v14 = vpop.eup %1789  ;;  %1541 = vmatmul.mubr.f32.gmra.mrb[40].mxu0 %v827_v5 }
 0x1b4   :  { %v1792_v15 = vpop.eup %1791  ;;  %v828_v16 = vmul.f32 %v1790_v14, %v334_v58 }
 0x1b5   :  { %v831_v43 = vmul.f32 %v1792_v15, %v349_v41 }
 0x1b6   :  { %1543 = vmatprep.mubr.f32.mxu0 %v828_v16 }
 0x1b7   :  { %v1794_v9 = vpop.eup %1793  ;;  %1544 = vmatmul.mubr.f32.gmra.mrb[42].mxu0 %v829_v56 }
 0x1b8   :  { %v1796_v17 = vpop.eup %1795  ;;  %v830_v18 = vmul.f32 %v1794_v9, %v344_v60 }
 0x1b9   :  { %v833_v40 = vmul.f32 %v1796_v17, %v2170_v7 }
 0x1ba   :  { %1546 = vmatprep.mubr.f32.mxu0 %v830_v18 }
 0x1bb   :  { %v1798_v19 = vpop.eup %1797  ;;  %1547 = vmatmul.mubr.f32.gmra.mrb[44].mxu0 %v831_v43 }
 0x1bc   :  { %v832_v0 = vmul.f32 %v1798_v19, %v354_v62 }
 0x1be   :  { %1549 = vmatprep.mubr.f32.mxu0 %v832_v0 }
 0x1bf   :  { %1550 = vmatmul.mubr.f32.gmra.mrb[46].mxu0 %v833_v40 }
 0x253   :  { %v1506_v63 = vpop.f32.mrb[16].mxu0 }
 0x254   :  { %v929_v53 = vadd.f32 %v1506_v63, %v2279_v2  ;;  %v923_v20 = vpop.f32.mrb[17].mxu0 }
 0x255   :  { %v924_v7 = vadd.f32 %v2279_v2, %v923_v20 }
 0x256   :  { %1083 = vst [vmem:[#allocation10 + $0x8] sm:$0xff] %v929_v53 }
 0x257   :  { %1082 = vst [vmem:[#allocation10] sm:$0xff] %v924_v7  ;;  %v1509_v4 = vpop.f32.mrb[18].mxu0 }
 0x258   :  { %v939_v8 = vadd.f32 %v1509_v4, %v2279_v2  ;;  %v933_v21 = vpop.f32.mrb[19].mxu0 }
 0x259   :  { %v934_v22 = vadd.f32 %v2279_v2, %v933_v21 }
 0x25a   :  { %1085 = vst [vmem:[#allocation10 + $0x18] sm:$0xff] %v939_v8 }
 0x25b   :  { %1084 = vst [vmem:[#allocation10 + $0x10] sm:$0xff] %v934_v22  ;;  %v1512_v23 = vpop.f32.mrb[20].mxu0 }
 0x25c   :  { %v949_v42 = vadd.f32 %v1512_v23, %v2279_v2  ;;  %v943_v1 = vpop.f32.mrb[21].mxu0 }
 0x25d   :  { %v944_v24 = vadd.f32 %v2279_v2, %v943_v1 }
 0x25e   :  { %1087 = vst [vmem:[#allocation10 + $0x28] sm:$0xff] %v949_v42 }
 0x25f   :  { %1086 = vst [vmem:[#allocation10 + $0x20] sm:$0xff] %v944_v24 }
 0x261   :  { %v1515_v11 = vpop.f32.mrb[22].mxu0 }
 0x262   :  { %v959_v25 = vadd.f32 %v1515_v11, %v2279_v2  ;;  %v953_v45 = vpop.f32.mrb[23].mxu0 }
 0x263   :  { %v954_v26 = vadd.f32 %v2279_v2, %v953_v45 }
 0x264   :  { %1089 = vst [vmem:[#allocation10 + $0x38] sm:$0xff] %v959_v25 }
 0x265   :  { %1088 = vst [vmem:[#allocation10 + $0x30] sm:$0xff] %v954_v26  ;;  %v1518_v55 = vpop.f32.mrb[24].mxu0 }
 0x266   :  { %v969_v44 = vadd.f32 %v1518_v55, %v2279_v2  ;;  %v963_v27 = vpop.f32.mrb[25].mxu0 }
 0x267   :  { %v964_v28 = vadd.f32 %v2279_v2, %v963_v27 }
 0x268   :  { %1091 = vst [vmem:[#allocation10 + $0x48] sm:$0xff] %v969_v44 }
 0x269   :  { %1090 = vst [vmem:[#allocation10 + $0x40] sm:$0xff] %v964_v28  ;;  %v1521_v3 = vpop.f32.mrb[26].mxu0 }
 0x26a   :  { %v979_v47 = vadd.f32 %v1521_v3, %v2279_v2  ;;  %v973_v57 = vpop.f32.mrb[27].mxu0 }
 0x26b   :  { %v974_v29 = vadd.f32 %v2279_v2, %v973_v57 }
 0x26c   :  { %1093 = vst [vmem:[#allocation10 + $0x58] sm:$0xff] %v979_v47 }
 0x26d   :  { %1092 = vst [vmem:[#allocation10 + $0x50] sm:$0xff] %v974_v29  ;;  %v1524_v46 = vpop.f32.mrb[28].mxu0 }
 0x26e   :  { %v989_v30 = vadd.f32 %v1524_v46, %v2279_v2  ;;  %v983_v31 = vpop.f32.mrb[29].mxu0 }
 0x26f   :  { %v984_v32 = vadd.f32 %v2279_v2, %v983_v31 }
 0x270   :  { %1095 = vst [vmem:[#allocation10 + $0x68] sm:$0xff] %v989_v30 }
 0x271   :  { %1094 = vst [vmem:[#allocation10 + $0x60] sm:$0xff] %v984_v32  ;;  %v1527_v48 = vpop.f32.mrb[30].mxu0 }
 0x272   :  { %v999_v33 = vadd.f32 %v1527_v48, %v2279_v2  ;;  %v993_v34 = vpop.f32.mrb[31].mxu0 }
 0x273   :  { %v994_v50 = vadd.f32 %v2279_v2, %v993_v34 }
 0x274   :  { %1097 = vst [vmem:[#allocation10 + $0x78] sm:$0xff] %v999_v33 }
 0x275   :  { %1096 = vst [vmem:[#allocation10 + $0x70] sm:$0xff] %v994_v50  ;;  %v1530_v35 = vpop.f32.mrb[32].mxu0 }
 0x276   :  { %v1009_v36 = vadd.f32 %v1530_v35, %v2279_v2  ;;  %v1003_v37 = vpop.f32.mrb[33].mxu0 }
 0x277   :  { %v1004_v38 = vadd.f32 %v2279_v2, %v1003_v37 }
 0x278   :  { %1099 = vst [vmem:[#allocation10 + $0x88] sm:$0xff] %v1009_v36 }
 0x279   :  { %1098 = vst [vmem:[#allocation10 + $0x80] sm:$0xff] %v1004_v38 }
 0x27a   :  { %v1533_v39 = vpop.f32.mrb[34].mxu0 }
 0x27b   :  { %v1019_v6 = vadd.f32 %v1533_v39, %v2279_v2  ;;  %v1013_v52 = vpop.f32.mrb[35].mxu0 }
 0x27c   :  { %v1014_v59 = vadd.f32 %v2279_v2, %v1013_v52 }
 0x27d   :  { %1101 = vst [vmem:[#allocation10 + $0x98] sm:$0xff] %v1019_v6 }
 0x27e   :  { %1100 = vst [vmem:[#allocation10 + $0x90] sm:$0xff] %v1014_v59  ;;  %v1536_v49 = vpop.f32.mrb[36].mxu0 }
 0x27f   :  { %v1029_v54 = vadd.f32 %v1536_v49, %v2279_v2  ;;  %v1023_v5 = vpop.f32.mrb[37].mxu0 }
 0x280   :  { %v1024_v10 = vadd.f32 %v2279_v2, %v1023_v5 }
 0x281   :  { %1103 = vst [vmem:[#allocation10 + $0xa8] sm:$0xff] %v1029_v54 }
 0x282   :  { %1102 = vst [vmem:[#allocation10 + $0xa0] sm:$0xff] %v1024_v10  ;;  %v1539_v12 = vpop.f32.mrb[38].mxu0 }
 0x283   :  { %v1039_v51 = vadd.f32 %v1539_v12, %v2279_v2  ;;  %v1033_v13 = vpop.f32.mrb[39].mxu0 }
 0x284   :  { %v1034_v61 = vadd.f32 %v2279_v2, %v1033_v13 }
 0x285   :  { %1105 = vst [vmem:[#allocation10 + $0xb8] sm:$0xff] %v1039_v51 }
 0x286   :  { %1104 = vst [vmem:[#allocation10 + $0xb0] sm:$0xff] %v1034_v61  ;;  %v1542_v56 = vpop.f32.mrb[40].mxu0 }
 0x287   :  { %v1049_v58 = vadd.f32 %v1542_v56, %v2279_v2  ;;  %v1043_v14 = vpop.f32.mrb[41].mxu0 }
 0x288   :  { %v1044_v41 = vadd.f32 %v2279_v2, %v1043_v14 }
 0x289   :  { %1107 = vst [vmem:[#allocation10 + $0xc8] sm:$0xff] %v1049_v58 }
 0x28a   :  { %1106 = vst [vmem:[#allocation10 + $0xc0] sm:$0xff] %v1044_v41  ;;  %v1545_v15 = vpop.f32.mrb[42].mxu0 }
 0x28b   :  { %v1059_v16 = vadd.f32 %v1545_v15, %v2279_v2  ;;  %v1053_v43 = vpop.f32.mrb[43].mxu0 }
 0x28c   :  { %v1054_v60 = vadd.f32 %v2279_v2, %v1053_v43 }
 0x28d   :  { %1109 = vst [vmem:[#allocation10 + $0xd8] sm:$0xff] %v1059_v16 }
 0x28e   :  { %1108 = vst [vmem:[#allocation10 + $0xd0] sm:$0xff] %v1054_v60  ;;  %v1548_v9 = vpop.f32.mrb[44].mxu0 }
 0x28f   :  { %v1069_v17 = vadd.f32 %v1548_v9, %v2279_v2  ;;  %v1063_v18 = vpop.f32.mrb[45].mxu0 }
 0x290   :  { %v1064_v40 = vadd.f32 %v2279_v2, %v1063_v18 }
 0x291   :  { %1111 = vst [vmem:[#allocation10 + $0xe8] sm:$0xff] %v1069_v17 }
 0x292   :  { %1110 = vst [vmem:[#allocation10 + $0xe0] sm:$0xff] %v1064_v40  ;;  %v1551_v62 = vpop.f32.mrb[46].mxu0 }
 0x293   :  { %v1079_v19 = vadd.f32 %v1551_v62, %v2279_v2  ;;  %v1073_v0 = vpop.f32.mrb[47].mxu0 }
 0x294   :  { %v1074_v63 = vadd.f32 %v2279_v2, %v1073_v0 }
 0x295   :  { %1113 = vst [vmem:[#allocation10 + $0xf8] sm:$0xff] %v1079_v19 }
 0x296   :  { %1112 = vst [vmem:[#allocation10 + $0xf0] sm:$0xff] %v1074_v63 }
 0x297   :  { %1898 = shalt.err (!%p1895_p8)
}
 0x298   :  { %s1899_s11 = scalar_lea.hbm %s2335_s7, 4096 }
 0x299   :  { %p1900_p9 = scmp.ne.s32.totalorder %s2335_s7, %s1899_s11  ;;  %p1903_p10 = scmp.lt.u32.totalorder %s1899_s11, %s2335_s7 }
 0x29b   :  { %p1905_p11 = pnand %p1903_p10, %p1900_p9 }
 0x29d   :  { %1908 = shalt.err (!%p1905_p11)
}
 0x29e   :  { %1125 = dma.vmem_to_hbm [thread:$0]  %s1120_s30, 4096, %s2335_s7, [#allocation4], %s1919_s13, %s1919_s13, %s1920_s14  }
 0x29f   :  { %1915 = dma.done.wait [#allocation4], 4096  }
 0x2a0   :  { %1916 = vsyncadd [#allocation4], 4294963200 }
 0x2a1   :  { %1129 = vsyncpa [#allocation3], 1 }
 0x2a2   :  { %1130 = vsyncpa [#allocation6], 1 }
 0x2a3   :  { %1131 = vsyncpa [#allocation9], 1 }
 0x2a4   :  { %1132 = vsyncpa [#allocation4], 1 }

</bundles_post_ra>
